<compile_context>
chip_gen: v5e
topology: v5e:2x2
jax: 0.10.0
libtpu: 0.0.40
codegen_flags: <defaults>
</compile_context>

<pallas_src>
import jax
import jax.numpy as jnp
from jax import lax
from jax.experimental import pallas as pl
from jax.experimental.pallas import tpu as pltpu

EPS = 1e-5


# ----------------------------------------------------------------------------
# Kernels
# ----------------------------------------------------------------------------
def _revin_norm_kernel(x_ref, w_ref, b_ref, y_ref, stats_ref):
    # x_ref: (BB, T, C); w_ref/b_ref: (1, C)
    # y_ref: (BB, T, C); stats_ref: (BB, 2, C)  [row 0 = mean, row 1 = stdev]
    x = x_ref[...].astype(jnp.float32)
    mean = jnp.mean(x, axis=1, keepdims=True)                 # (BB, 1, C)
    xc = x - mean                                             # reused for var
    var = jnp.mean(xc * xc, axis=1, keepdims=True)            # biased (unbiased=False)
    inv_std = lax.rsqrt(var + EPS)                            # EUP slot
    std = (var + EPS) * inv_std                               # == sqrt(var + EPS)
    scale = w_ref[...] * inv_std                              # (BB, 1, C) per-channel
    y = xc * scale + b_ref[...]                               # one FMA per element
    y_ref[...] = y.astype(y_ref.dtype)
    stats_ref[...] = jnp.concatenate([mean, std], axis=1).astype(stats_ref.dtype)


def _revin_denorm_kernel(x_ref, mean_ref, std_ref, w_ref, b_ref, y_ref):
    # x_ref: (BB, T, C); mean/std: (BB, 1, C); w/b: (1, C)
    x = x_ref[...].astype(jnp.float32)
    inv_w = 1.0 / (w_ref[...] + EPS * EPS)                    # per-channel, O(C)
    scale = std_ref[...] * inv_w                              # (BB, 1, C)
    offset = mean_ref[...] - b_ref[...] * scale               # (BB, 1, C)
    y_ref[...] = (x * scale + offset).astype(y_ref.dtype)     # one FMA per element


# ----------------------------------------------------------------------------
# Block-size selection (generation-safe: fits v5e's 16 MiB default scoped VMEM
# and v7x's 64 MiB physical VMEM without raising vmem_limit_bytes).
# ----------------------------------------------------------------------------
def _choose_bb(B, T, C, itemsize=4):
    per_batch = max(T * C * itemsize, 1)         # bytes of one (T, C) f32 slab
    target = 2 * 1024 * 1024                     # aim for ~2 MiB x-tiles
    budget = 12 * 1024 * 1024                    # 2x(in) + 2x(out) double-buffered
    bb = max(1, target // per_batch)
    cap = max(1, budget // (4 * per_batch))
    return int(min(B, bb, cap))


# ----------------------------------------------------------------------------
# Wrappers
# ----------------------------------------------------------------------------
def revin_norm(x, weight, bias):
    """x: (B, T, C); weight, bias: (C,). Returns (y, mean, stdev)."""
    B, T, C = x.shape
    w2 = weight.reshape(1, C).astype(jnp.float32)
    b2 = bias.reshape(1, C).astype(jnp.float32)
    bb = _choose_bb(B, T, C)

    y, stats = pl.pallas_call(
        _revin_norm_kernel,
        out_shape=(
            jax.ShapeDtypeStruct((B, T, C), x.dtype),
            jax.ShapeDtypeStruct((B, 2, C), jnp.float32),
        ),
        grid_spec=pltpu.PrefetchScalarGridSpec(
            num_scalar_prefetch=0,
            grid=(pl.cdiv(B, bb),),
            in_specs=[
                pl.BlockSpec((bb, T, C), lambda b: (b, 0, 0)),
                pl.BlockSpec((1, C), lambda b: (0, 0)),
                pl.BlockSpec((1, C), lambda b: (0, 0)),
            ],
            out_specs=[
                pl.BlockSpec((bb, T, C), lambda b: (b, 0, 0)),
                pl.BlockSpec((bb, 2, C), lambda b: (b, 0, 0)),
            ],
        ),
        compiler_params=pltpu.CompilerParams(
            dimension_semantics=("parallel",)),
    )(x, w2, b2)

    mean = stats[:, 0:1, :]
    std = stats[:, 1:2, :]
    return y, mean, std


def revin_denorm(x, mean, stdev, weight, bias):
    """Invert revin_norm. x: (B, T, C); mean/stdev: (B, 1, C)."""
    B, T, C = x.shape
    w2 = weight.reshape(1, C).astype(jnp.float32)
    b2 = bias.reshape(1, C).astype(jnp.float32)
    bb = _choose_bb(B, T, C)

    y = pl.pallas_call(
        _revin_denorm_kernel,
        out_shape=jax.ShapeDtypeStruct((B, T, C), x.dtype),
        grid_spec=pltpu.PrefetchScalarGridSpec(
            num_scalar_prefetch=0,
            grid=(pl.cdiv(B, bb),),
            in_specs=[
                pl.BlockSpec((bb, T, C), lambda b: (b, 0, 0)),
                pl.BlockSpec((bb, 1, C), lambda b: (b, 0, 0)),
                pl.BlockSpec((bb, 1, C), lambda b: (b, 0, 0)),
                pl.BlockSpec((1, C), lambda b: (0, 0)),
                pl.BlockSpec((1, C), lambda b: (0, 0)),
            ],
            out_specs=pl.BlockSpec((bb, T, C), lambda b: (b, 0, 0)),
        ),
        compiler_params=pltpu.CompilerParams(
            dimension_semantics=("parallel",)),
    )(x, mean.astype(jnp.float32), stdev.astype(jnp.float32), w2, b2)
    return y


class RevIN:
    """JAX/Pallas port of the PyTorch RevIN module (affine=True)."""

    def __init__(self, num_features: int, eps: float = 1e-5, affine: bool = True):
        assert eps == EPS, "kernel compiled with eps=1e-5"
        assert affine, "only the affine=True path is implemented in-kernel"
        self.num_features = num_features
        # deterministic init, matching nn.Parameter(ones/zeros)
        self.affine_weight = jnp.ones((num_features,), jnp.float32)
        self.affine_bias = jnp.zeros((num_features,), jnp.float32)
        self.mean = None
        self.stdev = None

    def __call__(self, x, mode: str):
        if mode == "norm":
            y, mean, std = revin_norm(x, self.affine_weight, self.affine_bias)
            self.mean, self.stdev = mean, std
            return y
        elif mode == "denorm":
            return revin_denorm(x, self.mean, self.stdev,
                                self.affine_weight, self.affine_bias)
        else:
            raise NotImplementedError


# ----------------------------------------------------------------------------
# Reference + self-test
# ----------------------------------------------------------------------------
def _reference_norm(x, w, b):
    mean = jnp.mean(x, axis=1, keepdims=True)
    var = jnp.var(x, axis=1, keepdims=True)  # biased (unbiased=False)
    std = jnp.sqrt(var + EPS)
    return (x - mean) / std * w + b, mean, std


def _reference_denorm(x, mean, std, w, b):
    y = (x - b) / (w + EPS * EPS)
    return y * std + mean


if __name__ == "__main__":
    B, T, C = 4, 16, 32  # batch, seq, num_features
    key = jax.random.PRNGKey(0)
    x = jax.random.normal(key, (B, T, C), dtype=jnp.float32) * 3.0 + 1.5

    model = RevIN(num_features=C)
    # perturb affine params deterministically so the affine path is exercised
    model.affine_weight = model.affine_weight * 1.25
    model.affine_bias = model.affine_bias + 0.5

    y = model(x, "norm")
    jax.block_until_ready(y)

    # correctness check vs. plain-JAX reference
    y_ref, m_ref, s_ref = _reference_norm(x, model.affine_weight, model.affine_bias)
    assert jnp.allclose(y, y_ref, atol=1e-4, rtol=1e-4)
    assert jnp.allclose(model.mean, m_ref, atol=1e-4, rtol=1e-4)
    assert jnp.allclose(model.stdev, s_ref, atol=1e-4, rtol=1e-4)

    # denorm vs. reference + round-trip: denorm(norm(x)) ≈ x
    x_rec = model(y, "denorm")
    jax.block_until_ready(x_rec)
    x_rec_ref = _reference_denorm(y_ref, m_ref, s_ref,
                                  model.affine_weight, model.affine_bias)
    assert jnp.allclose(x_rec, x_rec_ref, atol=1e-4, rtol=1e-4)
    assert jnp.allclose(x_rec, x, atol=1e-4, rtol=1e-4)

    print("KERNEL_OK")
</pallas_src>

<mosaic_0001>
module attributes {stable_mosaic.version = 11 : i64} {
  func.func @_revin_norm_kernel(%arg0: i32, %arg1: memref<4x16x32xf32, #tpu.memory_space<vmem>>, %arg2: memref<1x32xf32, #tpu.memory_space<vmem>>, %arg3: memref<1x32xf32, #tpu.memory_space<vmem>>, %arg4: memref<4x16x32xf32, #tpu.memory_space<vmem>>, %arg5: memref<4x2x32xf32, #tpu.memory_space<vmem>>) attributes {dimension_semantics = [#tpu.dimension_semantics<parallel>], iteration_bounds = array<i64: 1>, scalar_prefetch = 0 : i64, scratch_operands = 0 : i64, tpu.core_type = #tpu.core_type<tc>, window_params = [{transform_indices = @transform_0, window_bounds = array<i64: 4, 16, 32>}, {pipeline_mode = #tpu.pipeline_mode<synchronous>, transform_indices = @transform_1, window_bounds = array<i64: 1, 32>}, {pipeline_mode = #tpu.pipeline_mode<synchronous>, transform_indices = @transform_2, window_bounds = array<i64: 1, 32>}, {transform_indices = @transform_3, window_bounds = array<i64: 4, 16, 32>}, {transform_indices = @transform_4, window_bounds = array<i64: 4, 2, 32>}]} {
    %c0 = arith.constant 0 : index
    %c0_0 = arith.constant 0 : index
    %c0_1 = arith.constant 0 : index
    %0 = vector.load %arg1[%c0, %c0_0, %c0_1] : memref<4x16x32xf32, #tpu.memory_space<vmem>>, vector<4x16x32xf32>
    %cst = arith.constant dense<0.000000e+00> : vector<4x32xf32>
    %1 = vector.multi_reduction <add>, %0, %cst [1] : vector<4x16x32xf32> to vector<4x32xf32>
    %2 = vector.shape_cast %1 : vector<4x32xf32> to vector<4x1x32xf32>
    %cst_2 = arith.constant 1.600000e+01 : f32
    %3 = vector.broadcast %cst_2 : f32 to vector<4x1x32xf32>
    %4 = arith.divf %2, %3 : vector<4x1x32xf32>
    %5 = vector.broadcast %4 : vector<4x1x32xf32> to vector<4x16x32xf32>
    %6 = arith.subf %0, %5 : vector<4x16x32xf32>
    %7 = arith.mulf %6, %6 : vector<4x16x32xf32>
    %cst_3 = arith.constant dense<0.000000e+00> : vector<4x32xf32>
    %8 = vector.multi_reduction <add>, %7, %cst_3 [1] : vector<4x16x32xf32> to vector<4x32xf32>
    %9 = vector.shape_cast %8 : vector<4x32xf32> to vector<4x1x32xf32>
    %cst_4 = arith.constant 1.600000e+01 : f32
    %10 = vector.broadcast %cst_4 : f32 to vector<4x1x32xf32>
    %11 = arith.divf %9, %10 : vector<4x1x32xf32>
    %cst_5 = arith.constant 9.99999974E-6 : f32
    %12 = vector.broadcast %cst_5 : f32 to vector<4x1x32xf32>
    %13 = arith.addf %11, %12 : vector<4x1x32xf32>
    %14 = math.rsqrt %13 : vector<4x1x32xf32>
    %cst_6 = arith.constant 9.99999974E-6 : f32
    %15 = vector.broadcast %cst_6 : f32 to vector<4x1x32xf32>
    %16 = arith.addf %11, %15 : vector<4x1x32xf32>
    %17 = arith.mulf %16, %14 : vector<4x1x32xf32>
    %c0_7 = arith.constant 0 : index
    %c0_8 = arith.constant 0 : index
    %18 = vector.load %arg2[%c0_7, %c0_8] : memref<1x32xf32, #tpu.memory_space<vmem>>, vector<1x32xf32>
    %19 = vector.shape_cast %18 : vector<1x32xf32> to vector<1x1x32xf32>
    %20 = vector.broadcast %19 : vector<1x1x32xf32> to vector<4x1x32xf32>
    %21 = arith.mulf %20, %14 : vector<4x1x32xf32>
    %22 = vector.broadcast %21 : vector<4x1x32xf32> to vector<4x16x32xf32>
    %23 = arith.mulf %6, %22 : vector<4x16x32xf32>
    %c0_9 = arith.constant 0 : index
    %c0_10 = arith.constant 0 : index
    %24 = vector.load %arg3[%c0_9, %c0_10] : memref<1x32xf32, #tpu.memory_space<vmem>>, vector<1x32xf32>
    %25 = vector.shape_cast %24 : vector<1x32xf32> to vector<1x1x32xf32>
    %26 = vector.broadcast %25 : vector<1x1x32xf32> to vector<4x16x32xf32>
    %27 = arith.addf %23, %26 : vector<4x16x32xf32>
    %c0_11 = arith.constant 0 : index
    %c0_12 = arith.constant 0 : index
    %c0_13 = arith.constant 0 : index
    %28 = vector.load %arg4[%c0_11, %c0_12, %c0_13] : memref<4x16x32xf32, #tpu.memory_space<vmem>>, vector<4x16x32xf32>
    tpu.vector_store %arg4[%c0_11, %c0_12, %c0_13], %27 {strides = array<i32>} : memref<4x16x32xf32, #tpu.memory_space<vmem>>, vector<4x16x32xf32>,
    %29 = tpu.concatenate %4, %17 in 1 : vector<4x1x32xf32>, vector<4x1x32xf32> -> vector<4x2x32xf32>
    %c0_14 = arith.constant 0 : index
    %c0_15 = arith.constant 0 : index
    %c0_16 = arith.constant 0 : index
    %30 = vector.load %arg5[%c0_14, %c0_15, %c0_16] : memref<4x2x32xf32, #tpu.memory_space<vmem>>, vector<4x2x32xf32>
    tpu.vector_store %arg5[%c0_14, %c0_15, %c0_16], %29 {strides = array<i32>} : memref<4x2x32xf32, #tpu.memory_space<vmem>>, vector<4x2x32xf32>,
    return
  }
  func.func @transform_0(%arg0: i32) -> (i32, i32, i32) {
    %c0_i32 = arith.constant 0 : i32
    %c0_i32_0 = arith.constant 0 : i32
    %c0_i32_1 = arith.constant 0 : i32
    return %arg0, %c0_i32, %c0_i32_0 : i32, i32, i32
  }
  func.func @transform_1(%arg0: i32) -> (i32, i32) {
    %c0_i32 = arith.constant 0 : i32
    %c0_i32_0 = arith.constant 0 : i32
    %c0_i32_1 = arith.constant 0 : i32
    return %c0_i32, %c0_i32_0 : i32, i32
  }
  func.func @transform_2(%arg0: i32) -> (i32, i32) {
    %c0_i32 = arith.constant 0 : i32
    %c0_i32_0 = arith.constant 0 : i32
    %c0_i32_1 = arith.constant 0 : i32
    return %c0_i32, %c0_i32_0 : i32, i32
  }
  func.func @transform_3(%arg0: i32) -> (i32, i32, i32) {
    %c0_i32 = arith.constant 0 : i32
    %c0_i32_0 = arith.constant 0 : i32
    %c0_i32_1 = arith.constant 0 : i32
    return %arg0, %c0_i32, %c0_i32_0 : i32, i32, i32
  }
  func.func @transform_4(%arg0: i32) -> (i32, i32, i32) {
    %c0_i32 = arith.constant 0 : i32
    %c0_i32_0 = arith.constant 0 : i32
    %c0_i32_1 = arith.constant 0 : i32
    return %arg0, %c0_i32, %c0_i32_0 : i32, i32, i32
  }
}

</mosaic_0001>

<bundles_post_ra>
// kernel: tpu_custom_call.1
= control target key start
LH: loop header
LB: loop body
LE: loop exit
PB: predicated region body
PF: predicated region fallthrough
CT: control target
= control target key end

     0   :  { %10 = vsyncpa [#allocation3], 0  ;;  %s591_s0 = inlined_call_operand.hbm [shape: f32[4,16,32], index: 0, kind: input, shape index: {}]   ;;  %s592_s1 = inlined_call_operand.hbm [shape: f32[1,32], index: 1, kind: input, shape index: {}]   ;;  %s593_s2 = inlined_call_operand.vmem [shape: f32[1,32], index: 2, kind: input, shape index: {}]   ;;  %s594_s3 = inlined_call_operand.hbm [shape: f32[4,16,32], index: 3, kind: output, shape index: {0}]   ;;  %s595_s4 = inlined_call_operand.hbm [shape: f32[4,2,32], index: 4, kind: output, shape index: {1}]  }
   0x1   :  { %11 = vsyncpa [#allocation6], 0 }
   0x2   :  { %12 = vsyncpa [#allocation4], 0 }
   0x3   :  { %13 = vsyncpa [#allocation9], 0  ;;  %s18_s17 = sshll.u32 %s591_s0, 4  ;;  %s425_s18 = smov [#allocation2]   ;;  %s19_s17 = int_to_ptr.hbm [resolvable:$true] %s18_s17 }
   0x4   :  { %s20_s19 = sshll.u32 %s425_s18, 4  ;;  %s32_s22 = sshll.u32 %s592_s1, 4  ;;  %s21_s19 = int_to_ptr.vmem [resolvable:$true] %s20_s19  ;;  %s33_s22 = int_to_ptr.hbm [resolvable:$true] %s32_s22 }
   0x5   :  { %s426_s23 = smov 128   ;;  %s427_s24 = smov 8  }
   0x6   :  { %26 = dma.hbm_to_vmem [thread:$0]  %s19_s17, 1024, %s21_s19, [#allocation3], %s426_s23, %s426_s23, %s427_s24  }
   0x7   :  { %s428_s25 = smov [#allocation5]  }
   0x8   :  { %s34_s26 = sshll.u32 %s428_s25, 4  ;;  %s35_s26 = int_to_ptr.vmem [resolvable:$true] %s34_s26 }
   0x9   :  { %37 = dma.hbm_to_vmem [thread:$0]  %s33_s22, 16, %s35_s26, [#allocation6]  }
   0xa   :  { %417 = dma.done.wait [#allocation3], 1024  }
   0xb   :  { %418 = vsyncadd [#allocation3], 4294966272 }
   0xc   :  { %419 = dma.done.wait [#allocation6], 16  }
   0xd   :  { %420 = vsyncadd [#allocation6], 4294967280  ;;  %v429_v0 = vmov 16.0   ;;  %vm56_vm0 = vcmask 261120   ;;  %v48_v2 = vld [vmem:[#allocation2] sm:$0xff]  ;;  %v49_v3 = vld [vmem:[#allocation2 + $0x8] sm:$0xff] }
   0xe   :  { %311 = vrcp.f32 %v429_v0  ;;  %v57_v4 = vsel %vm56_vm0, %v48_v2, 0.0  ;;  %v58_v5 = vsel %vm56_vm0, %v49_v3, 0.0  ;;  %v50_v7 = vld [vmem:[#allocation2 + $0x10] sm:$0xff]  ;;  %v51_v8 = vld [vmem:[#allocation2 + $0x18] sm:$0xff]  ;;  %v52_v9 = vld [vmem:[#allocation2 + $0x20] sm:$0xff]  ;;  %vm253_vm13 = vcmask 1040384  }
   0xf   :  { %v59_v10 = vadd.f32 %v58_v5, %v57_v4  ;;  %v66_v11 = vsel %vm56_vm0, %v50_v7, 0.0  ;;  %v67_v12 = vsel %vm56_vm0, %v51_v8, 0.0  ;;  %v53_v13 = vld [vmem:[#allocation2 + $0x28] sm:$0xff]  ;;  %v75_v14 = vsel %vm56_vm0, %v52_v9, 0.0  ;;  %v54_v15 = vld [vmem:[#allocation2 + $0x30] sm:$0xff]  ;;  %v55_v16 = vld [vmem:[#allocation2 + $0x38] sm:$0xff] }
  0x10   :  { %v68_v18 = vadd.f32 %v67_v12, %v66_v11  ;;  %v76_v19 = vsel %vm56_vm0, %v53_v13, 0.0  ;;  %v84_v20 = vsel %vm56_vm0, %v54_v15, 0.0  ;;  %v85_v23 = vsel %vm56_vm0, %v55_v16, 0.0  ;;  %s269_s30 = sshll.u32 %s594_s3, 4  ;;  %s431_s5 = smov [#allocation8]   ;;  %s270_s30 = int_to_ptr.hbm [resolvable:$true] %s269_s30 }
  0x11   :  { %v60_v21 = vrot.slane %v59_v10, 4  ;;  %v77_v22 = vadd.f32 %v76_v19, %v75_v14  ;;  %v86_v26 = vadd.f32 %v85_v23, %v84_v20  ;;  %vm258_vm15 = vcmask 254976   ;;  %s280_s6 = sshll.u32 %s431_s5, 4  ;;  %s282_s9 = sshll.u32 %s595_s4, 4  ;;  %s281_s6 = int_to_ptr.vmem [resolvable:$true] %s280_s6  ;;  %s283_s9 = int_to_ptr.hbm [resolvable:$true] %s282_s9 }
  0x12   :  { %v69_v25 = vrot.slane %v68_v18, 4  ;;  %s432_s3 = smov 32   ;;  %s433_s4 = smov 2  }
  0x13   :  { %v61_v27 = vadd.f32 %v60_v21, %v59_v10  ;;  %v78_v28 = vrot.slane %v77_v22, 4  ;;  %v87_v30 = vrot.slane %v86_v26, 4 }
  0x14   :  { %v312_v1 = vpop.eup %311  ;;  %v70_v29 = vadd.f32 %v69_v25, %v68_v18 }
  0x15   :  { %v94_v6 = vmul.f32 16.0, %v312_v1  ;;  %v62_v31 = vrot.slane %v61_v27, 2  ;;  %v79_v32 = vadd.f32 %v78_v28, %v77_v22  ;;  %v88_v35 = vadd.f32 %v87_v30, %v86_v26 }
  0x16   :  { %v71_v34 = vrot.slane %v70_v29, 2  ;;  %vm98_vm1 = vweird.f32 %v312_v1 }
  0x17   :  { %v95_v17 = vsub.f32 1.0, %v94_v6  ;;  %v63_v36 = vadd.f32 %v62_v31, %v61_v27  ;;  %v80_v37 = vrot.slane %v79_v32, 2  ;;  %v89_v39 = vrot.slane %v88_v35, 2 }
  0x18   :  { %v72_v38 = vadd.f32 %v71_v34, %v70_v29 }
  0x19   :  { %v96_v24 = vmul.f32 %v312_v1, %v95_v17  ;;  %v64_v40 = vrot.slane %v63_v36, 1  ;;  %v81_v41 = vadd.f32 %v80_v37, %v79_v32  ;;  %v90_v44 = vadd.f32 %v89_v39, %v88_v35 }
  0x1a   :  { %v73_v43 = vrot.slane %v72_v38, 1 }
  0x1b   :  { %v97_v33 = vadd.f32 %v312_v1, %v96_v24  ;;  %v65_v45 = vadd.f32 %v64_v40, %v63_v36  ;;  %v82_v46 = vrot.slane %v81_v41, 1  ;;  %v91_v48 = vrot.slane %v90_v44, 1 }
  0x1c   :  { %v74_v47 = vadd.f32 %v73_v43, %v72_v38 }
  0x1d   :  { %v476_v42 = vsel %vm98_vm1, %v312_v1, %v97_v33  ;;  %v83_v50 = vadd.f32 %v82_v46, %v81_v41  ;;  %v92_v52 = vadd.f32 %v91_v48, %v90_v44 }
  0x1e   :  { %v479_v49 = vmul.f32 %v476_v42, %v65_v45  ;;  %v482_v51 = vmul.f32 %v476_v42, %v74_v47 }
  0x1f   :  { %v491_v55 = vmul.f32 %v476_v42, %v83_v50  ;;  %v500_v58 = vmul.f32 %v476_v42, %v92_v52 }
  0x20   :  { %v485_v53 = vsub.f32 %v48_v2, %v479_v49  ;;  %v488_v54 = vsub.f32 %v49_v3, %v479_v49  ;;  %v494_v56 = vsub.f32 %v50_v7, %v482_v51  ;;  %v497_v57 = vsub.f32 %v51_v8, %v482_v51 }
  0x21   :  { %v507_v61 = vsub.f32 %v52_v9, %v491_v55  ;;  %v510_v62 = vsub.f32 %v53_v13, %v491_v55  ;;  %v517_v1 = vsub.f32 %v54_v15, %v500_v58  ;;  %v520_v2 = vsub.f32 %v55_v16, %v500_v58 }
  0x22   :  { %v112_v59 = vmul.f32 %v485_v53, %v485_v53  ;;  %v113_v60 = vmul.f32 %v488_v54, %v488_v54  ;;  %v114_v63 = vmul.f32 %v494_v56, %v494_v56  ;;  %v115_v0 = vmul.f32 %v497_v57, %v497_v57 }
  0x23   :  { %v116_v5 = vmul.f32 %v507_v61, %v507_v61  ;;  %v117_v6 = vmul.f32 %v510_v62, %v510_v62  ;;  %v118_v10 = vmul.f32 %v517_v1, %v517_v1  ;;  %v119_v14 = vmul.f32 %v520_v2, %v520_v2 }
  0x24   :  { %v120_v3 = vsel %vm56_vm0, %v112_v59, 0.0  ;;  %v121_v4 = vsel %vm56_vm0, %v113_v60, 0.0  ;;  %v129_v8 = vsel %vm56_vm0, %v114_v63, 0.0  ;;  %v130_v9 = vsel %vm56_vm0, %v115_v0, 0.0 }
  0x25   :  { %v122_v7 = vadd.f32 %v121_v4, %v120_v3  ;;  %v131_v11 = vadd.f32 %v130_v9, %v129_v8  ;;  %v138_v12 = vsel %vm56_vm0, %v116_v5, 0.0  ;;  %v139_v13 = vsel %vm56_vm0, %v117_v6, 0.0 }
  0x26   :  { %v140_v16 = vadd.f32 %v139_v13, %v138_v12  ;;  %v147_v17 = vsel %vm56_vm0, %v118_v10, 0.0  ;;  %v148_v19 = vsel %vm56_vm0, %v119_v14, 0.0 }
  0x27   :  { %v123_v15 = vrot.slane %v122_v7, 4  ;;  %v132_v18 = vrot.slane %v131_v11, 4  ;;  %v149_v22 = vadd.f32 %v148_v19, %v147_v17  ;;  %v208_v17 = vld [vmem:[#allocation5] sm:$0x1] }
  0x28   :  { %v141_v21 = vrot.slane %v140_v16, 4 }
  0x29   :  { %v124_v20 = vadd.f32 %v123_v15, %v122_v7  ;;  %v133_v23 = vadd.f32 %v132_v18, %v131_v11  ;;  %v150_v26 = vrot.slane %v149_v22, 4 }
  0x2a   :  { %v142_v25 = vadd.f32 %v141_v21, %v140_v16 }
  0x2b   :  { %v125_v24 = vrot.slane %v124_v20, 2  ;;  %v134_v27 = vrot.slane %v133_v23, 2  ;;  %v151_v30 = vadd.f32 %v150_v26, %v149_v22 }
  0x2c   :  { %v143_v29 = vrot.slane %v142_v25, 2 }
  0x2d   :  { %v126_v28 = vadd.f32 %v125_v24, %v124_v20  ;;  %v135_v31 = vadd.f32 %v134_v27, %v133_v23  ;;  %v152_v34 = vrot.slane %v151_v30, 2 }
  0x2e   :  { %v144_v33 = vadd.f32 %v143_v29, %v142_v25 }
  0x2f   :  { %v127_v32 = vrot.slane %v126_v28, 1  ;;  %v136_v35 = vrot.slane %v135_v31, 1  ;;  %v153_v38 = vadd.f32 %v152_v34, %v151_v30 }
  0x30   :  { %v145_v37 = vrot.slane %v144_v33, 1 }
  0x31   :  { %v128_v36 = vadd.f32 %v127_v32, %v126_v28  ;;  %v137_v39 = vadd.f32 %v136_v35, %v135_v31  ;;  %v154_v43 = vrot.slane %v153_v38, 1  ;;  %v310_v32 = vld [vmem:[%s593_s2] ss:$0 sm:$0xff]  ;;  %s430_s2 = smov [#allocation7]  }
  0x32   :  { %v146_v41 = vadd.f32 %v145_v37, %v144_v33  ;;  %s267_s27 = sshll.u32 %s430_s2, 4  ;;  %s268_s27 = int_to_ptr.vmem [resolvable:$true] %s267_s27 }
  0x33   :  { %v156_v40 = vmul.f32 %v128_v36, %v476_v42  ;;  %v157_v44 = vmul.f32 %v137_v39, %v476_v42  ;;  %v155_v47 = vadd.f32 %v154_v43, %v153_v38 }
  0x34   :  { %v158_v46 = vmul.f32 %v146_v41, %v476_v42 }
  0x35   :  { %v160_v45 = vadd.f32 1e-05, %v156_v40  ;;  %v161_v48 = vadd.f32 1e-05, %v157_v44  ;;  %v159_v52 = vmul.f32 %v155_v47, %v476_v42 }
  0x36   :  { %v162_v50 = vadd.f32 1e-05, %v158_v46 }
  0x37   :  { %313 = vrsqrt.f32 %v160_v45  ;;  %v542_v59 = vadd.f32 1e-05, %v159_v52  ;;  %vm170_vm2 = vweird.f32 %v160_v45  ;;  %vm180_vm4 = vweird.f32 %v161_v48 }
  0x38   :  { %315 = vrsqrt.f32 %v161_v48  ;;  %vm190_vm6 = vweird.f32 %v162_v50 }
  0x39   :  { %317 = vrsqrt.f32 %v162_v50  ;;  %vm200_vm9 = vweird.f32 %v542_v59 }
  0x3a   :  { %319 = vrsqrt.f32 %v542_v59 }
  0x3d   :  { %v314_v60 = vpop.eup %313 }
  0x3e   :  { %v316_v63 = vpop.eup %315  ;;  %v165_v0 = vmul.f32 %v314_v60, %v160_v45  ;;  %vm171_vm3 = vweird.f32 %v314_v60 }
  0x3f   :  { %v318_v3 = vpop.eup %317  ;;  %v175_v4 = vmul.f32 %v316_v63, %v161_v48  ;;  %vm181_vm5 = vweird.f32 %v316_v63  ;;  %vm172_vm8 = vmor %vm170_vm2, %vm171_vm3 }
  0x40   :  { %v166_v5 = vmul.f32 %v314_v60, %v165_v0  ;;  %v185_v6 = vmul.f32 %v318_v3, %v162_v50  ;;  %v320_v7 = vpop.eup %319  ;;  %vm191_vm7 = vweird.f32 %v318_v3  ;;  %vm182_vm10 = vmor %vm180_vm4, %vm181_vm5 }
  0x41   :  { %v176_v8 = vmul.f32 %v316_v63, %v175_v4  ;;  %v195_v42 = vmul.f32 %v320_v7, %v542_v59  ;;  %vm201_vm11 = vweird.f32 %v320_v7  ;;  %vm192_vm12 = vmor %vm190_vm6, %vm191_vm7 }
  0x42   :  { %v167_v9 = vmul.f32 0.5, %v166_v5  ;;  %v186_v10 = vmul.f32 %v318_v3, %v185_v6  ;;  %vm202_vm14 = vmor %vm200_vm9, %vm201_vm11 }
  0x43   :  { %v177_v11 = vmul.f32 0.5, %v176_v8  ;;  %v196_v14 = vmul.f32 %v320_v7, %v195_v42 }
  0x44   :  { %v168_v12 = vsub.f32 1.5, %v167_v9  ;;  %v187_v13 = vmul.f32 0.5, %v186_v10 }
  0x45   :  { %v178_v15 = vsub.f32 1.5, %v177_v11  ;;  %v197_v19 = vmul.f32 0.5, %v196_v14 }
  0x46   :  { %v169_v16 = vmul.f32 %v314_v60, %v168_v12  ;;  %v188_v18 = vsub.f32 1.5, %v187_v13 }
  0x47   :  { %v179_v20 = vmul.f32 %v316_v63, %v178_v15  ;;  %v198_v23 = vsub.f32 1.5, %v197_v19 }
  0x48   :  { %v173_v21 = vsel %vm172_vm8, %v314_v60, %v169_v16  ;;  %v189_v22 = vmul.f32 %v318_v3, %v188_v18 }
  0x49   :  { %v209_v24 = vmul.f32 %v208_v17, %v173_v21  ;;  %v183_v25 = vsel %vm182_vm10, %v316_v63, %v179_v20  ;;  %v204_v26 = vmul.f32 %v173_v21, %v160_v45  ;;  %v199_v29 = vmul.f32 %v320_v7, %v198_v23 }
  0x4a   :  { %v210_v27 = vmul.f32 %v208_v17, %v183_v25  ;;  %v193_v28 = vsel %vm192_vm12, %v318_v3, %v189_v22  ;;  %v205_v30 = vmul.f32 %v183_v25, %v161_v48 }
  0x4b   :  { %v217_v31 = vperm.slane %v209_v24, 0  ;;  %v211_v33 = vmul.f32 %v208_v17, %v193_v28  ;;  %v254_v34 = vsel %vm253_vm13, %v479_v49, %v204_v26  ;;  %v206_v35 = vmul.f32 %v193_v28, %v162_v50 }
  0x4c   :  { %v218_v36 = vperm.slane %v210_v27, 0  ;;  %v203_v37 = vsel %vm202_vm14, %v320_v7, %v199_v29  ;;  %259 = vst.msk [vmem:[#allocation8] sm:$0x3] %vm258_vm15, %v254_v34  ;;  %v255_v38 = vsel %vm253_vm13, %v482_v51, %v205_v30 }
  0x4d   :  { %v225_v39 = vmul.f32 %v217_v31, %v485_v53  ;;  %v226_v40 = vmul.f32 %v217_v31, %v488_v54  ;;  %v219_v41 = vperm.slane %v211_v33, 0  ;;  %v212_v43 = vmul.f32 %v208_v17, %v203_v37  ;;  %260 = vst.msk [vmem:[#allocation8 + $0x2] sm:$0x3] %vm258_vm15, %v255_v38 }
  0x4e   :  { %v227_v44 = vmul.f32 %v218_v36, %v494_v56  ;;  %v228_v49 = vmul.f32 %v218_v36, %v497_v57  ;;  %v256_v45 = vsel %vm253_vm13, %v491_v55, %v206_v35  ;;  %v207_v60 = vmul.f32 %v203_v37, %v542_v59 }
  0x4f   :  { %v237_v46 = vadd.f32 %v310_v32, %v225_v39  ;;  %v238_v47 = vadd.f32 %v310_v32, %v226_v40  ;;  %v229_v48 = vmul.f32 %v219_v41, %v507_v61  ;;  %v230_v51 = vmul.f32 %v219_v41, %v510_v62  ;;  %261 = vst.msk [vmem:[#allocation8 + $0x4] sm:$0x3] %vm258_vm15, %v256_v45 }
  0x50   :  { %v239_v53 = vadd.f32 %v310_v32, %v227_v44  ;;  %v240_v54 = vadd.f32 %v310_v32, %v228_v49  ;;  %v220_v50 = vperm.slane %v212_v43, 0 }
  0x51   :  { %245 = vst.msk [vmem:[#allocation7] sm:$0xff] %vm56_vm0, %v237_v46  ;;  %v241_v52 = vadd.f32 %v310_v32, %v229_v48  ;;  %v242_v56 = vadd.f32 %v310_v32, %v230_v51 }
  0x52   :  { %246 = vst.msk [vmem:[#allocation7 + $0x8] sm:$0xff] %vm56_vm0, %v238_v47  ;;  %v231_v57 = vmul.f32 %v220_v50, %v517_v1  ;;  %v232_v55 = vmul.f32 %v220_v50, %v520_v2  ;;  %v257_v1 = vsel %vm253_vm13, %v500_v58, %v207_v60 }
  0x53   :  { %247 = vst.msk [vmem:[#allocation7 + $0x10] sm:$0xff] %vm56_vm0, %v239_v53 }
  0x54   :  { %248 = vst.msk [vmem:[#allocation7 + $0x18] sm:$0xff] %vm56_vm0, %v240_v54  ;;  %v243_v61 = vadd.f32 %v310_v32, %v231_v57  ;;  %v244_v62 = vadd.f32 %v310_v32, %v232_v55 }
  0x55   :  { %249 = vst.msk [vmem:[#allocation7 + $0x20] sm:$0xff] %vm56_vm0, %v241_v52 }
  0x56   :  { %250 = vst.msk [vmem:[#allocation7 + $0x28] sm:$0xff] %vm56_vm0, %v242_v56 }
  0x57   :  { %251 = vst.msk [vmem:[#allocation7 + $0x30] sm:$0xff] %vm56_vm0, %v243_v61 }
  0x58   :  { %252 = vst.msk [vmem:[#allocation7 + $0x38] sm:$0xff] %vm56_vm0, %v244_v62 }
  0x59   :  { %262 = vst.msk [vmem:[#allocation8 + $0x6] sm:$0x3] %vm258_vm15, %v257_v1  ;;  %275 = dma.vmem_to_hbm [thread:$0]  %s268_s27, 1024, %s270_s30, [#allocation4], %s426_s23, %s426_s23, %s427_s24  }
  0x5a   :  { %288 = dma.vmem_to_hbm [thread:$0]  %s281_s6, 128, %s283_s9, [#allocation9], %s432_s3, %s432_s3, %s433_s4  }
  0x5b   :  { %421 = dma.done.wait [#allocation4], 1024  }
  0x5c   :  { %422 = vsyncadd [#allocation4], 4294966272 }
  0x5d   :  { %423 = dma.done.wait [#allocation9], 128  }
  0x5e   :  { %424 = vsyncadd [#allocation9], 4294967168 }
  0x5f   :  { %297 = vsyncpa [#allocation3], 1 }
  0x60   :  { %298 = vsyncpa [#allocation6], 1 }
  0x61   :  { %299 = vsyncpa [#allocation4], 1 }
  0x62   :  { %300 = vsyncpa [#allocation9], 1 }

</bundles_post_ra>
